<compile_context>
chip_gen: v7x
topology: tpu7x:2x2x1
jax: 0.10.0
libtpu: 0.0.40
codegen_flags: <defaults>
</compile_context>

<pallas_src>
import functools

import jax
import jax.numpy as jnp
from jax import lax
from jax.experimental import pallas as pl
from jax.experimental.pallas import tpu as pltpu


# ----------------------------- Pallas kernel ------------------------------ #
def _gcn_kernel(x_ref, wc_ref, wd_ref, o_ref, ext_ref, *,
                k, W, OW, OHW, HW, pad0):
    """Fused conv(valid, s=1) + ReLU + convT(s=1, p=0) + ReLU for one image.

    x_ref  : [1, Cin, H*W + (k-1)]  flattened image (+ k-1 zero guard columns)
    wc_ref : [k*k, Cout, Cin]       conv weight, tap-major
    wd_ref : [k*k, Cin, Cout]       deconv weight (spatially flipped), tap-major
    o_ref  : [1, Cin, H*W]          output image, flattened spatial on lanes
    ext_ref: [Cout, pad0 + H*W]     VMEM scratch: zero-padded intermediate cn1
    """
    Cout = wc_ref.shape[1]
    Cin = wc_ref.shape[2]

    # ---- conv1 + ReLU: cn1[o, m] = sum_t (wc[t] @ x[:, m + p*W + q]) --------
    acc = jnp.zeros((Cout, OHW), dtype=jnp.float32)
    for t in range(k * k):
        p, q = divmod(t, k)
        s = p * W + q
        acc = acc + jnp.dot(wc_ref[t], x_ref[0, :, s:s + OHW],
                            preferred_element_type=jnp.float32)
    # Columns with (m mod W) >= OW wrapped across image rows: zero them.  The
    # zeros then double as the right/left spatial padding for the deconv.
    col = lax.broadcasted_iota(jnp.int32, (Cout, OHW), 1)
    cn1 = jnp.where(col % W < OW, jnp.maximum(acc, 0.0), 0.0)

    # ---- zero-padded intermediate lives only in VMEM ------------------------
    ext_ref[...] = jnp.zeros_like(ext_ref)
    ext_ref[:, pad0:pad0 + OHW] = cn1

    # ---- Deconv1 + ReLU (full correlation on the padded intermediate) -------
    acc2 = jnp.zeros((Cin, HW), dtype=jnp.float32)
    for t in range(k * k):
        p, q = divmod(t, k)
        s = p * W + q
        acc2 = acc2 + jnp.dot(wd_ref[t], ext_ref[:, s:s + HW],
                              preferred_element_type=jnp.float32)
    o_ref[0] = jnp.maximum(acc2, 0.0)


# ------------------------------- JAX glue --------------------------------- #
def gcn_forward(x_nchw, conv_w, deconv_w):
    """relu(ConvTranspose2d(relu(Conv2d(x)))), stride 1, no padding, no bias."""
    N, Cin, H, W = x_nchw.shape
    Cout, Cin2, k, k2 = conv_w.shape
    assert Cin2 == Cin and k2 == k
    assert deconv_w.shape == (Cout, Cin, k, k)

    OH, OW = H - k + 1, W - k + 1
    HW, OHW = H * W, OH * W
    pad0 = (k - 1) * (W + 1)          # top + left zero padding (flattened)
    HWp = HW + (k - 1)                # right guard so all tap slices stay in-bounds

    # Flatten spatial (trivial, contiguous reshape) + k-1 guard columns.
    x_flat = x_nchw.reshape(N, Cin, HW)
    if k > 1:
        x_flat = jnp.pad(x_flat, ((0, 0), (0, 0), (0, k - 1)))

    # Tap-major weight matrices (tiny; fused/folded by XLA).
    # wc_mat[p*k+q, o, c] = conv_w[o, c, p, q]
    wc_mat = jnp.transpose(conv_w, (2, 3, 0, 1)).reshape(k * k, Cout, Cin)
    # wd_mat[p*k+q, o, i] = deconv_w[i, o, k-1-p, k-1-q]
    wd_mat = jnp.transpose(jnp.flip(deconv_w, axis=(2, 3)),
                           (2, 3, 1, 0)).reshape(k * k, Cin, Cout)

    kernel = functools.partial(_gcn_kernel, k=k, W=W, OW=OW, OHW=OHW,
                               HW=HW, pad0=pad0)

    flops = 2 * N * k * k * (Cout * Cin * OHW + Cin * Cout * HW)
    bytes_accessed = 4 * (N * Cin * HWp + wc_mat.size + wd_mat.size
                          + N * Cin * HW)

    out_flat = pl.pallas_call(
        kernel,
        out_shape=jax.ShapeDtypeStruct((N, Cin, HW), jnp.float32),
        grid=(N,),
        in_specs=[
            pl.BlockSpec((1, Cin, HWp), lambda n: (n, 0, 0)),
            pl.BlockSpec((k * k, Cout, Cin), lambda n: (0, 0, 0)),
            pl.BlockSpec((k * k, Cin, Cout), lambda n: (0, 0, 0)),
        ],
        out_specs=pl.BlockSpec((1, Cin, HW), lambda n: (n, 0, 0)),
        scratch_shapes=[pltpu.VMEM((Cout, pad0 + HW), jnp.float32)],
        compiler_params=pltpu.CompilerParams(
            dimension_semantics=("parallel",)),
        cost_estimate=pl.CostEstimate(
            flops=flops, transcendentals=0, bytes_accessed=bytes_accessed),
    )(x_flat, wc_mat, wd_mat)

    return out_flat.reshape(N, Cin, H, W)


# ------------------------------ reference --------------------------------- #
def _reference(x, conv_w, deconv_w):
    dn = ("NCHW", "OIHW", "NCHW")
    cn1 = jax.nn.relu(
        lax.conv_general_dilated(x, conv_w, (1, 1), "VALID",
                                 dimension_numbers=dn))
    k = deconv_w.shape[-1]
    w_eq = jnp.flip(jnp.transpose(deconv_w, (1, 0, 2, 3)), axis=(2, 3))
    dcn1 = jax.nn.relu(
        lax.conv_general_dilated(
            cn1, w_eq, (1, 1), [(k - 1, k - 1), (k - 1, k - 1)],
            dimension_numbers=dn))
    return dcn1


# --------------------------------- main ------------------------------------ #
if __name__ == "__main__":
    kernel_size = 3
    net_sum = 8
    N, C_in, H, W = 2, 4, 16, 16

    key = jax.random.PRNGKey(0)
    k_x, k_w1, k_w2 = jax.random.split(key, 3)

    x = jax.random.normal(k_x, (N, C_in, H, W), dtype=jnp.float32)
    # conv1 weight: [net_sum, C_in, k, k]; Deconv1 weight: [net_sum, C_in, k, k]
    conv_w = 0.1 * jax.random.normal(
        k_w1, (net_sum, C_in, kernel_size, kernel_size), dtype=jnp.float32)
    deconv_w = 0.1 * jax.random.normal(
        k_w2, (net_sum, C_in, kernel_size, kernel_size), dtype=jnp.float32)

    gcn = jax.jit(gcn_forward)
    out = jax.block_until_ready(gcn(x, conv_w, deconv_w))
    assert out.shape == (N, C_in, H, W), out.shape

    ref = jax.block_until_ready(_reference(x, conv_w, deconv_w))
    assert jnp.allclose(out, ref, atol=1e-4, rtol=1e-4), "mismatch vs XLA reference"

    print("KERNEL_OK")
</pallas_src>

<mosaic_0001>
module attributes {stable_mosaic.version = 11 : i64} {
  func.func @_gcn_kernel(%arg0: i32, %arg1: memref<1x4x258xf32, #tpu.memory_space<vmem>>, %arg2: memref<9x8x4xf32, #tpu.memory_space<vmem>>, %arg3: memref<9x4x8xf32, #tpu.memory_space<vmem>>, %arg4: memref<1x4x256xf32, #tpu.memory_space<vmem>>, %arg5: memref<8x290xf32, #tpu.memory_space<vmem>>) attributes {dimension_semantics = [#tpu.dimension_semantics<parallel>], iteration_bounds = array<i64: 2>, scalar_prefetch = 0 : i64, scratch_operands = 1 : i64, tpu.core_type = #tpu.core_type<tc>, window_params = [{transform_indices = @transform_0, window_bounds = array<i64: 1, 4, 258>}, {pipeline_mode = #tpu.pipeline_mode<synchronous>, transform_indices = @transform_1, window_bounds = array<i64: 9, 8, 4>}, {pipeline_mode = #tpu.pipeline_mode<synchronous>, transform_indices = @transform_2, window_bounds = array<i64: 9, 4, 8>}, {transform_indices = @transform_3, window_bounds = array<i64: 1, 4, 256>}]} {
    %cst = arith.constant 0.000000e+00 : f32
    %0 = vector.broadcast %cst : f32 to vector<8x224xf32>
    %c0 = arith.constant 0 : index
    %c0_0 = arith.constant 0 : index
    %c0_1 = arith.constant 0 : index
    %1 = vector.load %arg2[%c0, %c0_0, %c0_1] : memref<9x8x4xf32, #tpu.memory_space<vmem>>, vector<1x8x4xf32>
    %2 = vector.shape_cast %1 : vector<1x8x4xf32> to vector<8x4xf32>
    %c0_2 = arith.constant 0 : index
    %c0_3 = arith.constant 0 : index
    %c0_4 = arith.constant 0 : index
    %3 = vector.load %arg1[%c0_2, %c0_3, %c0_4] : memref<1x4x258xf32, #tpu.memory_space<vmem>>, vector<1x4x224xf32>
    %4 = vector.shape_cast %3 : vector<1x4x224xf32> to vector<4x224xf32>
    %cst_5 = arith.constant dense<0.000000e+00> : vector<8x224xf32>
    %5 = tpu.matmul %2, %4, %cst_5 {dimension_numbers = #tpu.dot_dimension_numbers<[1], [0], [0], [1], [0, 0, 1, 1], [], []>} : vector<8x4xf32>, vector<4x224xf32>, vector<8x224xf32> -> vector<8x224xf32>
    %6 = arith.addf %0, %5 : vector<8x224xf32>
    %c1 = arith.constant 1 : index
    %c0_6 = arith.constant 0 : index
    %c0_7 = arith.constant 0 : index
    %7 = vector.load %arg2[%c1, %c0_6, %c0_7] : memref<9x8x4xf32, #tpu.memory_space<vmem>>, vector<1x8x4xf32>
    %8 = vector.shape_cast %7 : vector<1x8x4xf32> to vector<8x4xf32>
    %c0_8 = arith.constant 0 : index
    %c0_9 = arith.constant 0 : index
    %c1_10 = arith.constant 1 : index
    %9 = vector.load %arg1[%c0_8, %c0_9, %c1_10] : memref<1x4x258xf32, #tpu.memory_space<vmem>>, vector<1x4x224xf32>
    %10 = vector.shape_cast %9 : vector<1x4x224xf32> to vector<4x224xf32>
    %cst_11 = arith.constant dense<0.000000e+00> : vector<8x224xf32>
    %11 = tpu.matmul %8, %10, %cst_11 {dimension_numbers = #tpu.dot_dimension_numbers<[1], [0], [0], [1], [0, 0, 1, 1], [], []>} : vector<8x4xf32>, vector<4x224xf32>, vector<8x224xf32> -> vector<8x224xf32>
    %12 = arith.addf %6, %11 : vector<8x224xf32>
    %c2 = arith.constant 2 : index
    %c0_12 = arith.constant 0 : index
    %c0_13 = arith.constant 0 : index
    %13 = vector.load %arg2[%c2, %c0_12, %c0_13] : memref<9x8x4xf32, #tpu.memory_space<vmem>>, vector<1x8x4xf32>
    %14 = vector.shape_cast %13 : vector<1x8x4xf32> to vector<8x4xf32>
    %c0_14 = arith.constant 0 : index
    %c0_15 = arith.constant 0 : index
    %c2_16 = arith.constant 2 : index
    %15 = vector.load %arg1[%c0_14, %c0_15, %c2_16] : memref<1x4x258xf32, #tpu.memory_space<vmem>>, vector<1x4x224xf32>
    %16 = vector.shape_cast %15 : vector<1x4x224xf32> to vector<4x224xf32>
    %cst_17 = arith.constant dense<0.000000e+00> : vector<8x224xf32>
    %17 = tpu.matmul %14, %16, %cst_17 {dimension_numbers = #tpu.dot_dimension_numbers<[1], [0], [0], [1], [0, 0, 1, 1], [], []>} : vector<8x4xf32>, vector<4x224xf32>, vector<8x224xf32> -> vector<8x224xf32>
    %18 = arith.addf %12, %17 : vector<8x224xf32>
    %c3 = arith.constant 3 : index
    %c0_18 = arith.constant 0 : index
    %c0_19 = arith.constant 0 : index
    %19 = vector.load %arg2[%c3, %c0_18, %c0_19] : memref<9x8x4xf32, #tpu.memory_space<vmem>>, vector<1x8x4xf32>
    %20 = vector.shape_cast %19 : vector<1x8x4xf32> to vector<8x4xf32>
    %c0_20 = arith.constant 0 : index
    %c0_21 = arith.constant 0 : index
    %c16 = arith.constant 16 : index
    %21 = vector.load %arg1[%c0_20, %c0_21, %c16] : memref<1x4x258xf32, #tpu.memory_space<vmem>>, vector<1x4x224xf32>
    %22 = vector.shape_cast %21 : vector<1x4x224xf32> to vector<4x224xf32>
    %cst_22 = arith.constant dense<0.000000e+00> : vector<8x224xf32>
    %23 = tpu.matmul %20, %22, %cst_22 {dimension_numbers = #tpu.dot_dimension_numbers<[1], [0], [0], [1], [0, 0, 1, 1], [], []>} : vector<8x4xf32>, vector<4x224xf32>, vector<8x224xf32> -> vector<8x224xf32>
    %24 = arith.addf %18, %23 : vector<8x224xf32>
    %c4 = arith.constant 4 : index
    %c0_23 = arith.constant 0 : index
    %c0_24 = arith.constant 0 : index
    %25 = vector.load %arg2[%c4, %c0_23, %c0_24] : memref<9x8x4xf32, #tpu.memory_space<vmem>>, vector<1x8x4xf32>
    %26 = vector.shape_cast %25 : vector<1x8x4xf32> to vector<8x4xf32>
    %c0_25 = arith.constant 0 : index
    %c0_26 = arith.constant 0 : index
    %c17 = arith.constant 17 : index
    %27 = vector.load %arg1[%c0_25, %c0_26, %c17] : memref<1x4x258xf32, #tpu.memory_space<vmem>>, vector<1x4x224xf32>
    %28 = vector.shape_cast %27 : vector<1x4x224xf32> to vector<4x224xf32>
    %cst_27 = arith.constant dense<0.000000e+00> : vector<8x224xf32>
    %29 = tpu.matmul %26, %28, %cst_27 {dimension_numbers = #tpu.dot_dimension_numbers<[1], [0], [0], [1], [0, 0, 1, 1], [], []>} : vector<8x4xf32>, vector<4x224xf32>, vector<8x224xf32> -> vector<8x224xf32>
    %30 = arith.addf %24, %29 : vector<8x224xf32>
    %c5 = arith.constant 5 : index
    %c0_28 = arith.constant 0 : index
    %c0_29 = arith.constant 0 : index
    %31 = vector.load %arg2[%c5, %c0_28, %c0_29] : memref<9x8x4xf32, #tpu.memory_space<vmem>>, vector<1x8x4xf32>
    %32 = vector.shape_cast %31 : vector<1x8x4xf32> to vector<8x4xf32>
    %c0_30 = arith.constant 0 : index
    %c0_31 = arith.constant 0 : index
    %c18 = arith.constant 18 : index
    %33 = vector.load %arg1[%c0_30, %c0_31, %c18] : memref<1x4x258xf32, #tpu.memory_space<vmem>>, vector<1x4x224xf32>
    %34 = vector.shape_cast %33 : vector<1x4x224xf32> to vector<4x224xf32>
    %cst_32 = arith.constant dense<0.000000e+00> : vector<8x224xf32>
    %35 = tpu.matmul %32, %34, %cst_32 {dimension_numbers = #tpu.dot_dimension_numbers<[1], [0], [0], [1], [0, 0, 1, 1], [], []>} : vector<8x4xf32>, vector<4x224xf32>, vector<8x224xf32> -> vector<8x224xf32>
    %36 = arith.addf %30, %35 : vector<8x224xf32>
    %c6 = arith.constant 6 : index
    %c0_33 = arith.constant 0 : index
    %c0_34 = arith.constant 0 : index
    %37 = vector.load %arg2[%c6, %c0_33, %c0_34] : memref<9x8x4xf32, #tpu.memory_space<vmem>>, vector<1x8x4xf32>
    %38 = vector.shape_cast %37 : vector<1x8x4xf32> to vector<8x4xf32>
    %c0_35 = arith.constant 0 : index
    %c0_36 = arith.constant 0 : index
    %c32 = arith.constant 32 : index
    %39 = vector.load %arg1[%c0_35, %c0_36, %c32] : memref<1x4x258xf32, #tpu.memory_space<vmem>>, vector<1x4x224xf32>
    %40 = vector.shape_cast %39 : vector<1x4x224xf32> to vector<4x224xf32>
    %cst_37 = arith.constant dense<0.000000e+00> : vector<8x224xf32>
    %41 = tpu.matmul %38, %40, %cst_37 {dimension_numbers = #tpu.dot_dimension_numbers<[1], [0], [0], [1], [0, 0, 1, 1], [], []>} : vector<8x4xf32>, vector<4x224xf32>, vector<8x224xf32> -> vector<8x224xf32>
    %42 = arith.addf %36, %41 : vector<8x224xf32>
    %c7 = arith.constant 7 : index
    %c0_38 = arith.constant 0 : index
    %c0_39 = arith.constant 0 : index
    %43 = vector.load %arg2[%c7, %c0_38, %c0_39] : memref<9x8x4xf32, #tpu.memory_space<vmem>>, vector<1x8x4xf32>
    %44 = vector.shape_cast %43 : vector<1x8x4xf32> to vector<8x4xf32>
    %c0_40 = arith.constant 0 : index
    %c0_41 = arith.constant 0 : index
    %c33 = arith.constant 33 : index
    %45 = vector.load %arg1[%c0_40, %c0_41, %c33] : memref<1x4x258xf32, #tpu.memory_space<vmem>>, vector<1x4x224xf32>
    %46 = vector.shape_cast %45 : vector<1x4x224xf32> to vector<4x224xf32>
    %cst_42 = arith.constant dense<0.000000e+00> : vector<8x224xf32>
    %47 = tpu.matmul %44, %46, %cst_42 {dimension_numbers = #tpu.dot_dimension_numbers<[1], [0], [0], [1], [0, 0, 1, 1], [], []>} : vector<8x4xf32>, vector<4x224xf32>, vector<8x224xf32> -> vector<8x224xf32>
    %48 = arith.addf %42, %47 : vector<8x224xf32>
    %c8 = arith.constant 8 : index
    %c0_43 = arith.constant 0 : index
    %c0_44 = arith.constant 0 : index
    %49 = vector.load %arg2[%c8, %c0_43, %c0_44] : memref<9x8x4xf32, #tpu.memory_space<vmem>>, vector<1x8x4xf32>
    %50 = vector.shape_cast %49 : vector<1x8x4xf32> to vector<8x4xf32>
    %c0_45 = arith.constant 0 : index
    %c0_46 = arith.constant 0 : index
    %c34 = arith.constant 34 : index
    %51 = vector.load %arg1[%c0_45, %c0_46, %c34] : memref<1x4x258xf32, #tpu.memory_space<vmem>>, vector<1x4x224xf32>
    %52 = vector.shape_cast %51 : vector<1x4x224xf32> to vector<4x224xf32>
    %cst_47 = arith.constant dense<0.000000e+00> : vector<8x224xf32>
    %53 = tpu.matmul %50, %52, %cst_47 {dimension_numbers = #tpu.dot_dimension_numbers<[1], [0], [0], [1], [0, 0, 1, 1], [], []>} : vector<8x4xf32>, vector<4x224xf32>, vector<8x224xf32> -> vector<8x224xf32>
    %54 = arith.addf %48, %53 : vector<8x224xf32>
    %55 = tpu.iota {dimensions = array<i32: 1>} : vector<8x224xi32>
    %c16_i32 = arith.constant 16 : i32
    %c0_i32 = arith.constant 0 : i32
    %56 = arith.cmpi eq, %c16_i32, %c0_i32 : i32
    %c1_i32 = arith.constant 1 : i32
    %57 = arith.select %56, %c1_i32, %c16_i32 : i32
    %58 = vector.broadcast %57 : i32 to vector<8x224xi32>
    %59 = arith.remsi %55, %58 : vector<8x224xi32>
    %c0_i32_48 = arith.constant 0 : i32
    %60 = vector.broadcast %c0_i32_48 : i32 to vector<8x224xi32>
    %61 = arith.cmpi ne, %59, %60 : vector<8x224xi32>
    %c0_i32_49 = arith.constant 0 : i32
    %62 = vector.broadcast %c0_i32_49 : i32 to vector<8x224xi32>
    %63 = arith.cmpi slt, %59, %62 : vector<8x224xi32>
    %c0_i32_50 = arith.constant 0 : i32
    %64 = arith.cmpi slt, %57, %c0_i32_50 : i32
    %65 = vector.broadcast %64 : i1 to vector<8x224xi1>
    %66 = vector.broadcast %65 : vector<8x224xi1> to vector<8x224xi1>
    %67 = arith.xori %63, %66 : vector<8x224xi1>
    %68 = arith.andi %67, %61 : vector<8x224xi1>
    %69 = vector.broadcast %57 : i32 to vector<8x224xi32>
    %70 = arith.addi %59, %69 : vector<8x224xi32>
    %71 = arith.select %68, %70, %59 : vector<8x224xi1>, vector<8x224xi32>
    %c14_i32 = arith.constant 14 : i32
    %72 = vector.broadcast %c14_i32 : i32 to vector<8x224xi32>
    %73 = arith.cmpi slt, %71, %72 : vector<8x224xi32>
    %cst_51 = arith.constant 0.000000e+00 : f32
    %74 = vector.broadcast %cst_51 : f32 to vector<8x224xf32>
    %75 = arith.maximumf %54, %74 : vector<8x224xf32>
    %cst_52 = arith.constant 0.000000e+00 : f32
    %76 = vector.broadcast %cst_52 : f32 to vector<8x224xf32>
    %77 = arith.select %73, %75, %76 : vector<8x224xi1>, vector<8x224xf32>
    %cst_53 = arith.constant 0.000000e+00 : f32
    %78 = vector.broadcast %cst_53 : f32 to vector<8x290xf32>
    %c0_54 = arith.constant 0 : index
    %c0_55 = arith.constant 0 : index
    %79 = vector.load %arg5[%c0_54, %c0_55] : memref<8x290xf32, #tpu.memory_space<vmem>>, vector<8x290xf32>
    tpu.vector_store %arg5[%c0_54, %c0_55], %78 {strides = array<i32>} : memref<8x290xf32, #tpu.memory_space<vmem>>, vector<8x290xf32>,
    %c0_56 = arith.constant 0 : index
    %c34_57 = arith.constant 34 : index
    %80 = vector.load %arg5[%c0_56, %c34_57] : memref<8x290xf32, #tpu.memory_space<vmem>>, vector<8x224xf32>
    tpu.vector_store %arg5[%c0_56, %c34_57], %77 {strides = array<i32>} : memref<8x290xf32, #tpu.memory_space<vmem>>, vector<8x224xf32>,
    %cst_58 = arith.constant 0.000000e+00 : f32
    %81 = vector.broadcast %cst_58 : f32 to vector<4x256xf32>
    %c0_59 = arith.constant 0 : index
    %c0_60 = arith.constant 0 : index
    %c0_61 = arith.constant 0 : index
    %82 = vector.load %arg3[%c0_59, %c0_60, %c0_61] : memref<9x4x8xf32, #tpu.memory_space<vmem>>, vector<1x4x8xf32>
    %83 = vector.shape_cast %82 : vector<1x4x8xf32> to vector<4x8xf32>
    %c0_62 = arith.constant 0 : index
    %c0_63 = arith.constant 0 : index
    %84 = vector.load %arg5[%c0_62, %c0_63] : memref<8x290xf32, #tpu.memory_space<vmem>>, vector<8x256xf32>
    %cst_64 = arith.constant dense<0.000000e+00> : vector<4x256xf32>
    %85 = tpu.matmul %83, %84, %cst_64 {dimension_numbers = #tpu.dot_dimension_numbers<[1], [0], [0], [1], [0, 0, 1, 1], [], []>} : vector<4x8xf32>, vector<8x256xf32>, vector<4x256xf32> -> vector<4x256xf32>
    %86 = arith.addf %81, %85 : vector<4x256xf32>
    %c1_65 = arith.constant 1 : index
    %c0_66 = arith.constant 0 : index
    %c0_67 = arith.constant 0 : index
    %87 = vector.load %arg3[%c1_65, %c0_66, %c0_67] : memref<9x4x8xf32, #tpu.memory_space<vmem>>, vector<1x4x8xf32>
    %88 = vector.shape_cast %87 : vector<1x4x8xf32> to vector<4x8xf32>
    %c0_68 = arith.constant 0 : index
    %c1_69 = arith.constant 1 : index
    %89 = vector.load %arg5[%c0_68, %c1_69] : memref<8x290xf32, #tpu.memory_space<vmem>>, vector<8x256xf32>
    %cst_70 = arith.constant dense<0.000000e+00> : vector<4x256xf32>
    %90 = tpu.matmul %88, %89, %cst_70 {dimension_numbers = #tpu.dot_dimension_numbers<[1], [0], [0], [1], [0, 0, 1, 1], [], []>} : vector<4x8xf32>, vector<8x256xf32>, vector<4x256xf32> -> vector<4x256xf32>
    %91 = arith.addf %86, %90 : vector<4x256xf32>
    %c2_71 = arith.constant 2 : index
    %c0_72 = arith.constant 0 : index
    %c0_73 = arith.constant 0 : index
    %92 = vector.load %arg3[%c2_71, %c0_72, %c0_73] : memref<9x4x8xf32, #tpu.memory_space<vmem>>, vector<1x4x8xf32>
    %93 = vector.shape_cast %92 : vector<1x4x8xf32> to vector<4x8xf32>
    %c0_74 = arith.constant 0 : index
    %c2_75 = arith.constant 2 : index
    %94 = vector.load %arg5[%c0_74, %c2_75] : memref<8x290xf32, #tpu.memory_space<vmem>>, vector<8x256xf32>
    %cst_76 = arith.constant dense<0.000000e+00> : vector<4x256xf32>
    %95 = tpu.matmul %93, %94, %cst_76 {dimension_numbers = #tpu.dot_dimension_numbers<[1], [0], [0], [1], [0, 0, 1, 1], [], []>} : vector<4x8xf32>, vector<8x256xf32>, vector<4x256xf32> -> vector<4x256xf32>
    %96 = arith.addf %91, %95 : vector<4x256xf32>
    %c3_77 = arith.constant 3 : index
    %c0_78 = arith.constant 0 : index
    %c0_79 = arith.constant 0 : index
    %97 = vector.load %arg3[%c3_77, %c0_78, %c0_79] : memref<9x4x8xf32, #tpu.memory_space<vmem>>, vector<1x4x8xf32>
    %98 = vector.shape_cast %97 : vector<1x4x8xf32> to vector<4x8xf32>
    %c0_80 = arith.constant 0 : index
    %c16_81 = arith.constant 16 : index
    %99 = vector.load %arg5[%c0_80, %c16_81] : memref<8x290xf32, #tpu.memory_space<vmem>>, vector<8x256xf32>
    %cst_82 = arith.constant dense<0.000000e+00> : vector<4x256xf32>
    %100 = tpu.matmul %98, %99, %cst_82 {dimension_numbers = #tpu.dot_dimension_numbers<[1], [0], [0], [1], [0, 0, 1, 1], [], []>} : vector<4x8xf32>, vector<8x256xf32>, vector<4x256xf32> -> vector<4x256xf32>
    %101 = arith.addf %96, %100 : vector<4x256xf32>
    %c4_83 = arith.constant 4 : index
    %c0_84 = arith.constant 0 : index
    %c0_85 = arith.constant 0 : index
    %102 = vector.load %arg3[%c4_83, %c0_84, %c0_85] : memref<9x4x8xf32, #tpu.memory_space<vmem>>, vector<1x4x8xf32>
    %103 = vector.shape_cast %102 : vector<1x4x8xf32> to vector<4x8xf32>
    %c0_86 = arith.constant 0 : index
    %c17_87 = arith.constant 17 : index
    %104 = vector.load %arg5[%c0_86, %c17_87] : memref<8x290xf32, #tpu.memory_space<vmem>>, vector<8x256xf32>
    %cst_88 = arith.constant dense<0.000000e+00> : vector<4x256xf32>
    %105 = tpu.matmul %103, %104, %cst_88 {dimension_numbers = #tpu.dot_dimension_numbers<[1], [0], [0], [1], [0, 0, 1, 1], [], []>} : vector<4x8xf32>, vector<8x256xf32>, vector<4x256xf32> -> vector<4x256xf32>
    %106 = arith.addf %101, %105 : vector<4x256xf32>
    %c5_89 = arith.constant 5 : index
    %c0_90 = arith.constant 0 : index
    %c0_91 = arith.constant 0 : index
    %107 = vector.load %arg3[%c5_89, %c0_90, %c0_91] : memref<9x4x8xf32, #tpu.memory_space<vmem>>, vector<1x4x8xf32>
    %108 = vector.shape_cast %107 : vector<1x4x8xf32> to vector<4x8xf32>
    %c0_92 = arith.constant 0 : index
    %c18_93 = arith.constant 18 : index
    %109 = vector.load %arg5[%c0_92, %c18_93] : memref<8x290xf32, #tpu.memory_space<vmem>>, vector<8x256xf32>
    %cst_94 = arith.constant dense<0.000000e+00> : vector<4x256xf32>
    %110 = tpu.matmul %108, %109, %cst_94 {dimension_numbers = #tpu.dot_dimension_numbers<[1], [0], [0], [1], [0, 0, 1, 1], [], []>} : vector<4x8xf32>, vector<8x256xf32>, vector<4x256xf32> -> vector<4x256xf32>
    %111 = arith.addf %106, %110 : vector<4x256xf32>
    %c6_95 = arith.constant 6 : index
    %c0_96 = arith.constant 0 : index
    %c0_97 = arith.constant 0 : index
    %112 = vector.load %arg3[%c6_95, %c0_96, %c0_97] : memref<9x4x8xf32, #tpu.memory_space<vmem>>, vector<1x4x8xf32>
    %113 = vector.shape_cast %112 : vector<1x4x8xf32> to vector<4x8xf32>
    %c0_98 = arith.constant 0 : index
    %c32_99 = arith.constant 32 : index
    %114 = vector.load %arg5[%c0_98, %c32_99] : memref<8x290xf32, #tpu.memory_space<vmem>>, vector<8x256xf32>
    %cst_100 = arith.constant dense<0.000000e+00> : vector<4x256xf32>
    %115 = tpu.matmul %113, %114, %cst_100 {dimension_numbers = #tpu.dot_dimension_numbers<[1], [0], [0], [1], [0, 0, 1, 1], [], []>} : vector<4x8xf32>, vector<8x256xf32>, vector<4x256xf32> -> vector<4x256xf32>
    %116 = arith.addf %111, %115 : vector<4x256xf32>
    %c7_101 = arith.constant 7 : index
    %c0_102 = arith.constant 0 : index
    %c0_103 = arith.constant 0 : index
    %117 = vector.load %arg3[%c7_101, %c0_102, %c0_103] : memref<9x4x8xf32, #tpu.memory_space<vmem>>, vector<1x4x8xf32>
    %118 = vector.shape_cast %117 : vector<1x4x8xf32> to vector<4x8xf32>
    %c0_104 = arith.constant 0 : index
    %c33_105 = arith.constant 33 : index
    %119 = vector.load %arg5[%c0_104, %c33_105] : memref<8x290xf32, #tpu.memory_space<vmem>>, vector<8x256xf32>
    %cst_106 = arith.constant dense<0.000000e+00> : vector<4x256xf32>
    %120 = tpu.matmul %118, %119, %cst_106 {dimension_numbers = #tpu.dot_dimension_numbers<[1], [0], [0], [1], [0, 0, 1, 1], [], []>} : vector<4x8xf32>, vector<8x256xf32>, vector<4x256xf32> -> vector<4x256xf32>
    %121 = arith.addf %116, %120 : vector<4x256xf32>
    %c8_107 = arith.constant 8 : index
    %c0_108 = arith.constant 0 : index
    %c0_109 = arith.constant 0 : index
    %122 = vector.load %arg3[%c8_107, %c0_108, %c0_109] : memref<9x4x8xf32, #tpu.memory_space<vmem>>, vector<1x4x8xf32>
    %123 = vector.shape_cast %122 : vector<1x4x8xf32> to vector<4x8xf32>
    %c0_110 = arith.constant 0 : index
    %c34_111 = arith.constant 34 : index
    %124 = vector.load %arg5[%c0_110, %c34_111] : memref<8x290xf32, #tpu.memory_space<vmem>>, vector<8x256xf32>
    %cst_112 = arith.constant dense<0.000000e+00> : vector<4x256xf32>
    %125 = tpu.matmul %123, %124, %cst_112 {dimension_numbers = #tpu.dot_dimension_numbers<[1], [0], [0], [1], [0, 0, 1, 1], [], []>} : vector<4x8xf32>, vector<8x256xf32>, vector<4x256xf32> -> vector<4x256xf32>
    %126 = arith.addf %121, %125 : vector<4x256xf32>
    %cst_113 = arith.constant 0.000000e+00 : f32
    %127 = vector.broadcast %cst_113 : f32 to vector<4x256xf32>
    %128 = arith.maximumf %126, %127 : vector<4x256xf32>
    %c0_114 = arith.constant 0 : index
    %c0_115 = arith.constant 0 : index
    %c0_116 = arith.constant 0 : index
    %129 = vector.load %arg4[%c0_114, %c0_115, %c0_116] : memref<1x4x256xf32, #tpu.memory_space<vmem>>, vector<1x4x256xf32>
    %130 = vector.shape_cast %129 : vector<1x4x256xf32> to vector<4x256xf32>
    %131 = vector.shape_cast %128 : vector<4x256xf32> to vector<1x4x256xf32>
    tpu.vector_store %arg4[%c0_114, %c0_115, %c0_116], %131 {strides = array<i32>} : memref<1x4x256xf32, #tpu.memory_space<vmem>>, vector<1x4x256xf32>,
    return
  }
  func.func @transform_0(%arg0: i32) -> (i32, i32, i32) {
    %c0_i32 = arith.constant 0 : i32
    %c0_i32_0 = arith.constant 0 : i32
    %c0_i32_1 = arith.constant 0 : i32
    return %arg0, %c0_i32, %c0_i32_0 : i32, i32, i32
  }
  func.func @transform_1(%arg0: i32) -> (i32, i32, i32) {
    %c0_i32 = arith.constant 0 : i32
    %c0_i32_0 = arith.constant 0 : i32
    %c0_i32_1 = arith.constant 0 : i32
    %c0_i32_2 = arith.constant 0 : i32
    return %c0_i32, %c0_i32_0, %c0_i32_1 : i32, i32, i32
  }
  func.func @transform_2(%arg0: i32) -> (i32, i32, i32) {
    %c0_i32 = arith.constant 0 : i32
    %c0_i32_0 = arith.constant 0 : i32
    %c0_i32_1 = arith.constant 0 : i32
    %c0_i32_2 = arith.constant 0 : i32
    return %c0_i32, %c0_i32_0, %c0_i32_1 : i32, i32, i32
  }
  func.func @transform_3(%arg0: i32) -> (i32, i32, i32) {
    %c0_i32 = arith.constant 0 : i32
    %c0_i32_0 = arith.constant 0 : i32
    %c0_i32_1 = arith.constant 0 : i32
    return %arg0, %c0_i32, %c0_i32_0 : i32, i32, i32
  }
}

</mosaic_0001>

<bundles_post_ra>
// kernel: gcn_forward.1
= control target key start
LH: loop header
LB: loop body
LE: loop exit
PB: predicated region body
PF: predicated region fallthrough
CT: control target
= control target key end

     0   :  { %s2039_s12 = smov 0   ;;  %s2240_s0 = inlined_call_operand.vmem [shape: f32[2,4,258], index: 0, kind: input, shape index: {}]   ;;  %s2241_s1 = inlined_call_operand.vmem [shape: f32[9,8,4], index: 1, kind: input, shape index: {}]   ;;  %s2242_s2 = inlined_call_operand.vmem [shape: f32[9,4,8], index: 2, kind: input, shape index: {}]   ;;  %s2243_s3 = inlined_call_operand.vmem [shape: f32[2,4,256], index: 3, kind: output, shape index: {}]  }
   0x1 LB: > { %s1886_s13 = sadd.s32 4294967295, %s2007_s12   ;;  %p1890_p0 = scmp.ge.s32.totalorder %s2007_s12, 1  ;;  %s2007_s12 = sphi %s2039_s12, %s13_s12  }
   0x2   : > { %p137_p1 = scmp.lt.s32.totalorder %s2007_s12, 3 }
   0x4   : > { %p138_p2 = pnand %p1890_p0, %p137_p1 }
   0x5   : > { %p161_p3 = scmp.lt.s32.totalorder (!%p138_p2), %s1886_s13, 1  ;;  %v2009_v0 = vmov (!%p138_p2), 0.0   ;;  %s2010_s18 = smov (!%p138_p2), 127   ;;  %vm187_vm0 = vcmask (!%p138_p2), 1043456   ;;  %vm181_vm1 = vcmask (!%p138_p2), 1039360   ;;  %v1894_v8 = vld [vmem:[%s2241_s1 + $0x8] sm:$0xff] (!%p138_p2)  ;;  %v988_v42 = vlaneseq (!%p138_p2) }
   0x6   : > { %141 = sbr.rel (%p138_p2) target bundleno = 942 (0x3ae), region = 32  ;;  %256 = vmatprep.mubr.f32.mxu0 (!%p138_p2), %v2009_v0  ;;  %1021 = vst [vmem:[#allocation2] sm:$0xff] (!%p138_p2), %v2009_v0  ;;  %1127 = vmatprep.mubr.f32.mxu1 (!%p138_p2), %v2009_v0  ;;  %s2011_s19 = smov (!%p138_p2), 126   ;;  %vm183_vm2 = vcmask (!%p138_p2), 31744   ;;  %vm350_vm3 = vcmask (!%p138_p2), 1031168   ;;  %v171_v11 = vld [vmem:[%s2241_s1] sm:$0xff] (!%p138_p2) }
   0x7   : > { %s2012_s20 = smov (!%p138_p2), 112   ;;  %s2013_s21 = smov (!%p138_p2), 111   ;;  %vm441_vm4 = vcmask (!%p138_p2), 916480   ;;  %v1901_v15 = vld [vmem:[%s2241_s1 + $0x10] sm:$0xff] (!%p138_p2)  ;;  %vm532_vm5 = vcmask (!%p138_p2), 908288   ;;  %v1905_v19 = vld [vmem:[%s2241_s1 + $0x18] sm:$0xff] (!%p138_p2) }
   0x8   : > { %s2014_s22 = smov (!%p138_p2), 110   ;;  %s2015_s23 = smov (!%p138_p2), 96   ;;  %vm623_vm6 = vcmask (!%p138_p2), 900096   ;;  %v1909_v24 = vld [vmem:[%s2241_s1 + $0x20] sm:$0xff] (!%p138_p2)  ;;  %vm714_vm7 = vcmask (!%p138_p2), 785408   ;;  %vm809_vm8 = vcmask (!%p138_p2), 777216  }
   0x9   : > { %s2016_s24 = smov (!%p138_p2), 95   ;;  %s2017_s25 = smov (!%p138_p2), 94   ;;  %v1913_v29 = vld [vmem:[%s2241_s1 + $0x28] sm:$0xff] (!%p138_p2)  ;;  %vm905_vm9 = vcmask (!%p138_p2), 769024   ;;  %v1917_v35 = vld [vmem:[%s2241_s1 + $0x30] sm:$0xff] (!%p138_p2)  ;;  %v1921_v39 = vld [vmem:[%s2241_s1 + $0x38] sm:$0xff] (!%p138_p2) }
   0xa   : > { %v1925_v41 = vld [vmem:[%s2241_s1 + $0x40] sm:$0xff] (!%p138_p2)  ;;  %v989_v43 = vand.u32 (!%p138_p2), 127, %v988_v42  ;;  %vm1023_vm10 = vcmask (!%p138_p2), 277504   ;;  %s2018_s27 = smov (!%p138_p2), 34   ;;  %vm1035_vm13 = vcmask (!%p138_p2), 1047824   ;;  %vm1038_vm14 = vcmask (!%p138_p2), 15360  }
   0xb   : > { %1024 = vst.msk [vmem:[#allocation2 + $0x10] sm:$0xff] (!%p138_p2), %vm1023_vm10, %v2009_v0  ;;  %v1929_v62 = vld [vmem:[%s2242_s2 + $0x4] sm:$0xf] (!%p138_p2)  ;;  %vm1059_vm15 = vcmask (!%p138_p2), 64512  }
   0xc   : > { %v990_v44 = vadd.s32 (!%p138_p2), 128, %v989_v43  ;;  %v995_v45 = vand.u32 (!%p138_p2), 15, %v989_v43  ;;  %v1944_v43 = vld [vmem:[%s2242_s2 + $0x20] sm:$0xf] (!%p138_p2) }
   0xd   : > { %s2245_s13 = smov (!%p161_p3, %s1886_s13), 1 }
   0xe   : > { %s1981_s14 = smul.u32 12, %s2245_s13  ;;  %v1002_v46 = vand.u32 15, %v990_v44  ;;  %vm1015_vm11 = vcmp.lt.s32.totalorder %v995_v45, 14  ;;  %s1948_s11 = sshll.u32 %s2245_s13, 3 }
   0xf   : > { %s170_s16 = scalar_lea.vmem %s2243_s3, %s1948_s11 }
  0x10   : > { %s165_s17 = scalar_lea.vmem %s2240_s0, %s1981_s14  ;;  %vm1016_vm12 = vcmp.lt.s32.totalorder %v1002_v46, 14 }
  0x11   : > { %v172_v1 = vld [vmem:[%s165_s17] sm:$0xff]  ;;  %v799_v3 = vld [vmem:[%s165_s17 + $0x8] sm:$0xf] }
  0x12   : > { %177 = vrot.lane.b32.xlu0 %v172_v1, %s2010_s18  ;;  %v176_v2 = vcombine.high %v172_v1, %v172_v1  ;;  %346 = vrot.lane.b32.xlu1 %v172_v1, %s2011_s19  ;;  %v895_v4 = vld [vmem:[%s165_s17 + $0x8] sm:$0xf] }
  0x16   : > { %179 = vrot.lane.b32.xlu0 %v176_v2, %s2010_s18  ;;  %348 = vrot.lane.b32.xlu1 %v176_v2, %s2011_s19 }
  0x1a   : > { %439 = vrot.lane.b32.xlu1 %v176_v2, %s2012_s20  ;;  %437 = vrot.lane.b32.xlu0 %v172_v1, %s2012_s20 }
  0x1e   : > { %530 = vrot.lane.b32.xlu1 %v176_v2, %s2013_s21  ;;  %528 = vrot.lane.b32.xlu0 %v172_v1, %s2013_s21 }
  0x22   : > { %621 = vrot.lane.b32.xlu1 %v176_v2, %s2014_s22  ;;  %619 = vrot.lane.b32.xlu0 %v172_v1, %s2014_s22 }
  0x26   : > { %710 = vrot.lane.b32.xlu0 %v172_v1, %s2015_s23  ;;  %712 = vrot.lane.b32.xlu1 %v176_v2, %s2015_s23 }
  0x2a   : > { %805 = vrot.lane.b32.xlu0 %v176_v2, %s2016_s24  ;;  %807 = vrot.lane.b32.xlu1 %v799_v3, %s2016_s24 }
  0x2e   : > { %803 = vrot.lane.b32.xlu0 %v172_v1, %s2016_s24  ;;  %901 = vrot.lane.b32.xlu1 %v176_v2, %s2017_s25 }
  0x32   : > { %899 = vrot.lane.b32.xlu1 %v172_v1, %s2017_s25  ;;  %903 = vrot.lane.b32.xlu0 %v895_v4, %s2017_s25 }
  0x84   : > { %v178_v5 = vpop.permute.xlu0 %177  ;;  %v347_v6 = vpop.permute.xlu1 %346 }
  0x88   : > { %v180_v7 = vpop.permute.xlu0 %179  ;;  %v349_v10 = vpop.permute.xlu1 %348 }
  0x89   : > { %1895 = vmatprep.subr.msk.mxu0 %vm187_vm0, %v180_v7  ;;  %v182_v9 = vsel %vm181_vm1, %v178_v5, %v180_v7  ;;  %v351_v12 = vsel %vm350_vm3, %v347_v6, %v349_v10  ;;  %v1040_v6 = vld [vmem:[%s2242_s2] sm:$0xf] }
  0x8a   : > { %1896 = vmatpush1.msk.msra.mxu0 %vm187_vm0, %v182_v9 }
  0x8b   : > { %1897 = vmatmul.mubr.msk.f32.vlgmr.msra.gmra.mrb[0].mxu0 %vm183_vm2, %v1894_v8  ;;  %1898 = vmatprep.subr.msk.mxu0 %vm187_vm0, %v176_v2 }
  0x8c   : > { %1899 = vmatpush1.msk.msra.mxu0 %vm187_vm0, %v172_v1  ;;  %334 = vmatprep.mubr.f32.mxu0 %v2009_v0  ;;  %v440_v13 = vpop.permute.xlu1 %439  ;;  %v438_v14 = vpop.permute.xlu0 %437 }
  0x8d   : > { %1902 = vmatprep.subr.msk.mxu0 %vm187_vm0, %v349_v10  ;;  %v442_v16 = vsel %vm441_vm4, %v438_v14, %v440_v13 }
  0x90   : > { %v531_v17 = vpop.permute.xlu1 %530  ;;  %v529_v18 = vpop.permute.xlu0 %528 }
  0x91   : > { %v533_v20 = vsel %vm532_vm5, %v529_v18, %v531_v17 }
  0x93   : > { %1900 = vmatmul.mubr.msk.f32.vlgmr.msra.gmra.mrb[0].mxu0 %vm183_vm2, %v171_v11 }
  0x94   : > { %1903 = vmatpush1.msk.msra.mxu0 %vm187_vm0, %v351_v12  ;;  %423 = vmatprep.mubr.f32.mxu0 %v2009_v0  ;;  %v620_v21 = vpop.permute.xlu0 %619  ;;  %v622_v22 = vpop.permute.xlu1 %621 }
  0x95   : > { %1906 = vmatprep.subr.msk.mxu0 %vm187_vm0, %v440_v13  ;;  %v624_v25 = vsel %vm623_vm6, %v620_v21, %v622_v22  ;;  %v1932_v13 = vld [vmem:[%s2242_s2 + $0x8] sm:$0xf] }
  0x98   : > { %v711_v23 = vpop.permute.xlu0 %710  ;;  %v713_v26 = vpop.permute.xlu1 %712 }
  0x99   : > { %v715_v30 = vsel %vm714_vm7, %v711_v23, %v713_v26 }
  0x9b   : > { %1904 = vmatmul.mubr.msk.f32.vlgmr.msra.gmra.mrb[0].mxu0 %vm183_vm2, %v1901_v15 }
  0x9c   : > { %1907 = vmatpush1.msk.msra.mxu0 %vm187_vm0, %v442_v16  ;;  %514 = vmatprep.mubr.f32.mxu0 %v2009_v0  ;;  %v806_v27 = vpop.permute.xlu0 %805  ;;  %v808_v28 = vpop.permute.xlu1 %807 }
  0x9d   : > { %1910 = vmatprep.subr.msk.mxu0 %vm187_vm0, %v531_v17  ;;  %v811_v31 = vsel %vm809_vm8, %v806_v27, %v808_v28 }
  0xa0   : > { %v804_v32 = vpop.permute.xlu0 %803  ;;  %v902_v34 = vpop.permute.xlu1 %901 }
  0xa1   : > { %v810_v36 = vsel %vm809_vm8, %v804_v32, %v806_v27 }
  0xa3   : > { %1908 = vmatmul.mubr.msk.f32.vlgmr.msra.gmra.mrb[0].mxu0 %vm183_vm2, %v1905_v19  ;;  %v1934_v19 = vld [vmem:[%s2242_s2 + $0xc] sm:$0xf] }
  0xa4   : > { %1911 = vmatpush1.msk.msra.mxu0 %vm187_vm0, %v533_v20  ;;  %605 = vmatprep.mubr.f32.mxu0 %v2009_v0  ;;  %v904_v33 = vpop.permute.xlu0 %903  ;;  %v900_v38 = vpop.permute.xlu1 %899 }
  0xa5   : > { %1914 = vmatprep.subr.msk.mxu0 %vm187_vm0, %v622_v22  ;;  %v907_v37 = vsel %vm905_vm9, %v902_v34, %v904_v33  ;;  %v906_v40 = vsel %vm905_vm9, %v900_v38, %v902_v34 }
  0xab   : > { %1912 = vmatmul.mubr.msk.f32.vlgmr.msra.gmra.mrb[0].mxu0 %vm183_vm2, %v1909_v24 }
  0xac   : > { %1915 = vmatpush1.msk.msra.mxu0 %vm187_vm0, %v624_v25  ;;  %696 = vmatprep.mubr.f32.mxu0 %v2009_v0  ;;  %v1936_v25 = vld [vmem:[%s2242_s2 + $0x10] sm:$0xf] }
  0xad   : > { %1918 = vmatprep.subr.msk.mxu0 %vm187_vm0, %v713_v26 }
  0xb3   : > { %1916 = vmatmul.mubr.msk.f32.vlgmr.msra.gmra.mrb[0].mxu0 %vm183_vm2, %v1913_v29 }
  0xb4   : > { %1919 = vmatpush1.msk.msra.mxu0 %vm187_vm0, %v715_v30  ;;  %787 = vmatprep.mubr.f32.mxu0 %v2009_v0  ;;  %v1938_v30 = vld [vmem:[%s2242_s2 + $0x14] sm:$0xf] }
  0xb5   : > { %1922 = vmatprep.subr.msk.mxu0 %vm187_vm0, %v811_v31 }
  0xbb   : > { %1920 = vmatmul.mubr.msk.f32.vlgmr.msra.gmra.mrb[0].mxu0 %vm183_vm2, %v1917_v35  ;;  %v1940_v35 = vld [vmem:[%s2242_s2 + $0x18] sm:$0xf] }
  0xbc   : > { %1923 = vmatpush1.msk.msra.mxu0 %vm187_vm0, %v810_v36  ;;  %883 = vmatprep.mubr.f32.mxu0 %v2009_v0 }
  0xbd   : > { %1926 = vmatprep.subr.msk.mxu0 %vm187_vm0, %v907_v37 }
  0xc3   : > { %1924 = vmatmul.mubr.msk.f32.vlgmr.msra.gmra.mrb[0].mxu0 %vm183_vm2, %v1921_v39 }
  0xc4   : > { %1927 = vmatpush1.msk.msra.mxu0 %vm187_vm0, %v906_v40  ;;  %979 = vmatprep.mubr.f32.mxu0 %v2009_v0 }
  0xcb   : > { %1928 = vmatmul.mubr.msk.f32.vlgmr.msra.gmra.mrb[0].mxu0 %vm183_vm2, %v1925_v41  ;;  %v1942_v41 = vld [vmem:[%s2242_s2 + $0x1c] sm:$0xf] }
 0x19e   : > { %v981_v47 = vpop.f32.mrb[0].mxu0 }
 0x19f   : > { %v1017_v48 = vmax.f32 %v981_v47, 0.0  ;;  %v983_v49 = vpop.f32.mrb[1].mxu0 }
 0x1a0   : > { %v1018_v50 = vmax.f32 %v983_v49, 0.0 }
 0x1a1   : > { %v1019_v51 = vsel %vm1015_vm11, %v1017_v48, 0.0 }
 0x1a2   : > { %1027 = vrot.lane.b32.xlu0 %v1019_v51, %s2018_s27  ;;  %v1020_v52 = vsel %vm1016_vm12, %v1018_v50, 0.0 }
 0x1a3   : > { %1029 = vrot.lane.b32.xlu1 %v1020_v52, %s2018_s27 }
 0x214   : > { %v1028_v53 = vpop.permute.xlu0 %1027 }
 0x215   : > { %1036 = vst.msk [vmem:[#allocation2] sm:$0xff] %vm1035_vm13, %v1028_v53  ;;  %v1030_v54 = vpop.permute.xlu1 %1029 }
 0x216   : > { %v1031_v55 = vsel %vm1023_vm10, %v1028_v53, %v1030_v54  ;;  %1039 = vst.msk [vmem:[#allocation2 + $0x10] sm:$0xff] %vm1038_vm14, %v1030_v54 }
 0x217   : > { %1051 = vrot.lane.b32.xlu0 %v1031_v55, %s2010_s18 }
 0x21c   : > { %v1041_v56 = vld [vmem:[#allocation2] sm:$0xff] }
 0x21d   : > { %v1045_v57 = vld [vmem:[#allocation2 + $0x10] sm:$0xff]  ;;  %1049 = vrot.lane.b32.xlu0 %v1041_v56, %s2010_s18 }
 0x21e   : > { %1053 = vrot.lane.b32.xlu1 %v1045_v57, %s2010_s18 }
 0x221   : > { %1214 = vrot.lane.b32.xlu0 %v1045_v57, %s2011_s19 }
 0x222   : > { %1212 = vrot.lane.b32.xlu1 %v1031_v55, %s2011_s19 }
 0x225   : > { %1300 = vrot.lane.b32.xlu0 %v1031_v55, %s2012_s20 }
 0x226   : > { %1210 = vrot.lane.b32.xlu1 %v1041_v56, %s2011_s19 }
 0x229   : > { %1298 = vrot.lane.b32.xlu0 %v1041_v56, %s2012_s20 }
 0x22a   : > { %1302 = vrot.lane.b32.xlu1 %v1045_v57, %s2012_s20 }
 0x22d   : > { %1390 = vrot.lane.b32.xlu0 %v1045_v57, %s2013_s21 }
 0x22e   : > { %1388 = vrot.lane.b32.xlu1 %v1031_v55, %s2013_s21 }
 0x231   : > { %1476 = vrot.lane.b32.xlu0 %v1031_v55, %s2014_s22 }
 0x232   : > { %1386 = vrot.lane.b32.xlu1 %v1041_v56, %s2013_s21 }
 0x235   : > { %1474 = vrot.lane.b32.xlu0 %v1041_v56, %s2014_s22 }
 0x236   : > { %1478 = vrot.lane.b32.xlu1 %v1045_v57, %s2014_s22 }
 0x239   : > { %1566 = vrot.lane.b32.xlu0 %v1045_v57, %s2015_s23 }
 0x23a   : > { %1564 = vrot.lane.b32.xlu1 %v1031_v55, %s2015_s23 }
 0x23d   : > { %1652 = vrot.lane.b32.xlu0 %v1031_v55, %s2016_s24 }
 0x23e   : > { %1562 = vrot.lane.b32.xlu1 %v1041_v56, %s2015_s23 }
 0x241   : > { %1650 = vrot.lane.b32.xlu0 %v1041_v56, %s2016_s24 }
 0x242   : > { %1654 = vrot.lane.b32.xlu1 %v1045_v57, %s2016_s24 }
 0x245   : > { %1742 = vrot.lane.b32.xlu0 %v1045_v57, %s2017_s25 }
 0x246   : > { %1740 = vrot.lane.b32.xlu1 %v1031_v55, %s2017_s25 }
 0x24a   : > { %1738 = vrot.lane.b32.xlu1 %v1041_v56, %s2017_s25 }
 0x289   : > { %v1052_v58 = vpop.permute.xlu0 %1051 }
 0x28f   : > { %v1050_v59 = vpop.permute.xlu0 %1049 }
 0x290   : > { %v1054_v60 = vpop.permute.xlu1 %1053  ;;  %v1055_v63 = vsel %vm181_vm1, %v1050_v59, %v1052_v58 }
 0x291   : > { %v1056_v61 = vsel %vm181_vm1, %v1052_v58, %v1054_v60 }
 0x292   : > { %1063 = vmatprep.subr.mxu1 %v1056_v61 }
 0x293   : > { %1064 = vmatpush1.msra.mxu1 %v1055_v63  ;;  %v1215_v1 = vpop.permute.xlu0 %1214 }
 0x294   : > { %v1213_v2 = vpop.permute.xlu1 %1212  ;;  %1930 = vmatmul.mubr.msk.f32.vlgmr.msra.gmra.mrb[0].mxu1 %vm1059_vm15, %v1929_v62  ;;  %1137 = vmatprep.subr.mxu1 %v1031_v55 }
 0x295   : > { %1138 = vmatpush1.msra.mxu1 %v1041_v56  ;;  %v1217_v3 = vsel %vm350_vm3, %v1213_v2, %v1215_v1  ;;  %1201 = vmatprep.mubr.f32.mxu1 %v2009_v0 }
 0x296   : > { %1223 = vmatprep.subr.mxu1 %v1217_v3 }
 0x297   : > { %v1301_v4 = vpop.permute.xlu0 %1300 }
 0x298   : > { %v1211_v5 = vpop.permute.xlu1 %1210 }
 0x299   : > { %v1216_v8 = vsel %vm350_vm3, %v1211_v5, %v1213_v2 }
 0x29b   : > { %v1299_v7 = vpop.permute.xlu0 %1298 }
 0x29c   : > { %v1303_v9 = vpop.permute.xlu1 %1302  ;;  %1931 = vmatmul.mubr.msk.f32.vlgmr.msra.gmra.mrb[0].mxu1 %vm1059_vm15, %v1040_v6  ;;  %v1304_v14 = vsel %vm441_vm4, %v1299_v7, %v1301_v4 }
 0x29d   : > { %1224 = vmatpush1.msra.mxu1 %v1216_v8  ;;  %v1305_v10 = vsel %vm441_vm4, %v1301_v4, %v1303_v9  ;;  %1287 = vmatprep.mubr.f32.mxu1 %v2009_v0 }
 0x29e   : > { %1311 = vmatprep.subr.mxu1 %v1305_v10 }
 0x29f   : > { %v1391_v11 = vpop.permute.xlu0 %1390 }
 0x2a0   : > { %v1389_v12 = vpop.permute.xlu1 %1388 }
 0x2a1   : > { %v1393_v17 = vsel %vm532_vm5, %v1389_v12, %v1391_v11 }
 0x2a3   : > { %v1477_v16 = vpop.permute.xlu0 %1476 }
 0x2a4   : > { %v1387_v15 = vpop.permute.xlu1 %1386  ;;  %1933 = vmatmul.mubr.msk.f32.vlgmr.msra.gmra.mrb[0].mxu1 %vm1059_vm15, %v1932_v13 }
 0x2a5   : > { %1312 = vmatpush1.msra.mxu1 %v1304_v14  ;;  %1375 = vmatprep.mubr.f32.mxu1 %v2009_v0  ;;  %v1392_v21 = vsel %vm532_vm5, %v1387_v15, %v1389_v12 }
 0x2a6   : > { %1399 = vmatprep.subr.mxu1 %v1393_v17 }
 0x2a7   : > { %v1475_v20 = vpop.permute.xlu0 %1474 }
 0x2a8   : > { %v1479_v18 = vpop.permute.xlu1 %1478  ;;  %v1480_v26 = vsel %vm623_vm6, %v1475_v20, %v1477_v16 }
 0x2a9   : > { %v1481_v22 = vsel %vm623_vm6, %v1477_v16, %v1479_v18 }
 0x2ab   : > { %v1567_v24 = vpop.permute.xlu0 %1566 }
 0x2ac   : > { %1935 = vmatmul.mubr.msk.f32.vlgmr.msra.gmra.mrb[0].mxu1 %vm1059_vm15, %v1934_v19  ;;  %v1565_v23 = vpop.permute.xlu1 %1564 }
 0x2ad   : > { %1400 = vmatpush1.msra.mxu1 %v1392_v21  ;;  %1463 = vmatprep.mubr.f32.mxu1 %v2009_v0  ;;  %v1569_v28 = vsel %vm714_vm7, %v1565_v23, %v1567_v24 }
 0x2ae   : > { %1487 = vmatprep.subr.mxu1 %v1481_v22 }
 0x2af   : > { %v1653_v29 = vpop.permute.xlu0 %1652 }
 0x2b0   : > { %v1563_v27 = vpop.permute.xlu1 %1562 }
 0x2b1   : > { %v1568_v32 = vsel %vm714_vm7, %v1563_v27, %v1565_v23 }
 0x2b3   : > { %v1651_v33 = vpop.permute.xlu0 %1650 }
 0x2b4   : > { %1937 = vmatmul.mubr.msk.f32.vlgmr.msra.gmra.mrb[0].mxu1 %vm1059_vm15, %v1936_v25  ;;  %v1655_v31 = vpop.permute.xlu1 %1654  ;;  %v1656_v38 = vsel %vm809_vm8, %v1651_v33, %v1653_v29 }
 0x2b5   : > { %1488 = vmatpush1.msra.mxu1 %v1480_v26  ;;  %1551 = vmatprep.mubr.f32.mxu1 %v2009_v0  ;;  %v1657_v34 = vsel %vm809_vm8, %v1653_v29, %v1655_v31 }
 0x2b6   : > { %1575 = vmatprep.subr.mxu1 %v1569_v28 }
 0x2b7   : > { %v1743_v37 = vpop.permute.xlu0 %1742 }
 0x2b8   : > { %v1741_v36 = vpop.permute.xlu1 %1740 }
 0x2b9   : > { %v1745_v39 = vsel %vm905_vm9, %v1741_v36, %v1743_v37 }
 0x2bc   : > { %1939 = vmatmul.mubr.msk.f32.vlgmr.msra.gmra.mrb[0].mxu1 %vm1059_vm15, %v1938_v30  ;;  %v1739_v40 = vpop.permute.xlu1 %1738 }
 0x2bd   : > { %1576 = vmatpush1.msra.mxu1 %v1568_v32  ;;  %1639 = vmatprep.mubr.f32.mxu1 %v2009_v0  ;;  %v1744_v42 = vsel %vm905_vm9, %v1739_v40, %v1741_v36 }
 0x2be   : > { %1663 = vmatprep.subr.mxu1 %v1657_v34 }
 0x2c4   : > { %1941 = vmatmul.mubr.msk.f32.vlgmr.msra.gmra.mrb[0].mxu1 %vm1059_vm15, %v1940_v35 }
 0x2c5   : > { %1664 = vmatpush1.msra.mxu1 %v1656_v38  ;;  %1727 = vmatprep.mubr.f32.mxu1 %v2009_v0 }
 0x2c6   : > { %1751 = vmatprep.subr.mxu1 %v1745_v39 }
 0x2cc   : > { %1943 = vmatmul.mubr.msk.f32.vlgmr.msra.gmra.mrb[0].mxu1 %vm1059_vm15, %v1942_v41 }
 0x2cd   : > { %1752 = vmatpush1.msra.mxu1 %v1744_v42  ;;  %1815 = vmatprep.mubr.f32.mxu1 %v2009_v0 }
 0x2d4   : > { %1945 = vmatmul.mubr.msk.f32.vlgmr.msra.gmra.mrb[0].mxu1 %vm1059_vm15, %v1944_v43 }
 0x3a7   : > { %v1817_v44 = vpop.f32.mrb[0].mxu1 }
 0x3a8   : > { %v1824_v45 = vmax.f32 %v1817_v44, 0.0  ;;  %v1819_v46 = vpop.f32.mrb[1].mxu1 }
 0x3a9   : > { %v1825_v47 = vmax.f32 %v1819_v46, 0.0 }
 0x3ab   : > { %v1828_v48 = vcombine.low %v1824_v45, %v1825_v47 }
 0x3ad   : > { %1830 = vst [vmem:[%s170_s16] sm:$0xff] %v1828_v48 }
 0x3ae PF: > { %s13_s12 = sadd.s32 1, %s2007_s12  }
 0x3af   : > { %p10_p4 = scmp.ge.s32.totalorder %s13_s12, 4  }
 0x3b1   :  { %12 = sbr.rel (!%p10_p4) target bundleno = 1 (0x1), region = 78 }

</bundles_post_ra>
